<compile_context>
chip_gen: v5e
topology: v5e:2x2
jax: 0.10.0
libtpu: 0.0.40
codegen_flags: <defaults>
</compile_context>

<pallas_src>
import math
import functools

import jax
import jax.numpy as jnp
from jax.experimental import pallas as pl
from jax.experimental.pallas import tpu as pltpu

# cfg.MODEL.HEADS.SCALE / MARGIN are not importable in-script; standard ArcFace defaults.
SCALE = 30.0
MARGIN = 0.50
EASY_MARGIN = False
EPS = 1e-12          # F.normalize default eps
LANE = 128           # TPU lane width
SUBLANE = 8          # f32 sublane width


def _round_up(a, b):
    return (a + b - 1) // b * b


def _vmem_capacity_bytes():
    """Physical VMEM of the current TPU generation (fallback: v7x per-TC 64 MiB)."""
    try:
        cap = getattr(pltpu.get_tpu_info(), "vmem_capacity_bytes", None)
        if cap:
            return int(cap)
    except Exception:
        pass
    return 64 << 20


def _arcmargin_kernel(lbl_ref, rx_ref, x_ref, w_ref, out_ref, *,
                      s, cos_m, sin_m, th, mm, easy_margin, n_labels):
    """Compute one (b_pad, TN) output slab for one streamed (TN, K) weight tile."""
    x = x_ref[...]                       # (b_pad, K)  resident, bf16
    w = w_ref[...]                       # (TN, K)     streamed weight tile, bf16
    rx = rx_ref[...]                     # (b_pad, 1)  f32, 1/max(||x_b||, eps)

    k = w.shape[1]
    tn = w.shape[0]
    dn = (((1,), (1,)), ((), ()))        # contract the K (last) dim of both operands

    # Per-row squared norms of the weight tile, produced lane-dense as (1, TN)
    # directly on the MXU (ones-vector contraction -> no relayout).  Squares are
    # formed in the streamed dtype on the VPU and accumulated in f32 on the MXU;
    # a full-tile f32 cast would create a tile-sized f32 VMEM temp.
    ones = jnp.ones((SUBLANE, k), w.dtype)
    ssq = jax.lax.dot_general(ones, w * w, dn,
                              preferred_element_type=jnp.float32)[0:1, :]    # (1, TN)
    rw = jax.lax.rsqrt(jnp.maximum(ssq, EPS * EPS))                          # (1, TN)

    # cosine = normalize(x) @ normalize(W)^T with normalization folded into cheap
    # post-matmul scaling; the W tile is fed to the MXU un-transposed (transposed-
    # RHS contraction -> native MXU path; verified no per-tile vxpose is needed).
    raw = jax.lax.dot_general(x, w, dn, preferred_element_type=jnp.float32)  # (b_pad, TN)
    cosine = raw * rx * rw

    sine = jnp.sqrt(jnp.clip(1.0 - cosine * cosine, 0.0, 1.0))
    phi = cosine * cos_m - sine * sin_m
    if easy_margin:
        phi = jnp.where(cosine > 0.0, phi, cosine)
    else:
        phi = jnp.where(cosine > th, phi, cosine - mm)

    # Reference quirk `one_hot[0, label_] = 1`: margin on ROW 0 only, at the
    # columns of ALL labels in the batch.  Build the column mask in-kernel from
    # the scalar-prefetched labels (SMEM) — no (1, N) scatter or one-hot DMA.
    col0 = pl.program_id(0) * tn
    col_ids = col0 + jax.lax.broadcasted_iota(jnp.int32, (1, tn), 1)         # (1, TN)
    hit = col_ids == lbl_ref[0]
    for i in range(1, n_labels):
        hit = jnp.logical_or(hit, col_ids == lbl_ref[i])
    row0 = jax.lax.broadcasted_iota(jnp.int32, cosine.shape, 0) == 0         # (b_pad, TN)
    mask = jnp.logical_and(row0, hit)

    # Single fused store (no second masked partial store over row 0).
    out_ref[...] = (jnp.where(mask, phi, cosine) * s).astype(out_ref.dtype)


def arc_margin_product(x, weight, label, *, s=SCALE, m=MARGIN,
                       easy_margin=EASY_MARGIN, block_n=None,
                       stream_dtype=jnp.bfloat16):
    """ArcMarginProduct.forward(input, label) — Pallas TPU implementation."""
    B, K = x.shape
    N, K2 = weight.shape
    assert K == K2

    cos_m = math.cos(m)
    sin_m = math.sin(m)
    th = math.cos(math.pi - m)
    mm = math.sin(math.pi - m) * m

    w_item = jnp.dtype(stream_dtype).itemsize
    vmem_cap = _vmem_capacity_bytes()

    # ---- tile geometry (generation-aware) ------------------------------------
    b_pad = _round_up(max(B, 1), SUBLANE)
    if block_n is None:
        # ~20% of physical VMEM per W buffer -> double-buffered W stream ~40% of
        # VMEM (≈13 MiB/buf on v7x, ≈26 MiB/buf on v5e/v6e): per-step overhead
        # (~0.35 µs) becomes a few % of each step's DMA time on every generation.
        target = max(512 * 1024, min(vmem_cap // 5, 32 * 1024 * 1024))
        tn = max(LANE, (target // (K * w_item)) // LANE * LANE)
        # Keep >= 4 grid steps so the "parallel" axis megacore-shards on v7x.
        if N >= 4 * LANE:
            tn = min(tn, _round_up(pl.cdiv(N, 4), LANE))
    else:
        tn = max(LANE, _round_up(block_n, LANE))
    tn = min(tn, _round_up(N, LANE))
    n_pad = _round_up(N, tn)
    grid = (n_pad // tn,)

    # ---- operand prep ----------------------------------------------------------
    x_f32 = x.astype(jnp.float32)
    # x-side reciprocal norm computed ONCE from the full-precision x; padded rows
    # get rx = 0 so their (already zero) cosine stays exactly zero.
    rx = jax.lax.rsqrt(jnp.maximum(jnp.sum(x_f32 * x_f32, axis=-1, keepdims=True),
                                   EPS * EPS))                    # (B, 1) f32

    xb = x_f32.astype(stream_dtype)
    wb = weight.astype(stream_dtype)      # stream W in bf16: halves HBM traffic
    if b_pad != B:
        xb = jnp.pad(xb, ((0, b_pad - B), (0, 0)))
        rx = jnp.pad(rx, ((0, b_pad - B), (0, 0)))
    if n_pad != N:
        wb = jnp.pad(wb, ((0, n_pad - N), (0, 0)))

    labels = label.astype(jnp.int32).reshape(-1)
    n_labels = int(labels.shape[0])

    kernel = functools.partial(
        _arcmargin_kernel, s=float(s), cos_m=cos_m, sin_m=sin_m, th=th, mm=mm,
        easy_margin=easy_margin, n_labels=n_labels)

    # ---- explicit VMEM budget (generation-aware, with headroom) ----------------
    vmem_est = (2 * tn * K * w_item          # double-buffered W tiles
                + 2 * b_pad * tn * 4         # double-buffered output tiles
                + b_pad * K * w_item + b_pad * 4)   # resident x, rx
    vmem_limit = 2 * vmem_est + (8 << 20)
    vmem_limit = int(min(max(vmem_limit, 32 << 20), vmem_cap * 3 // 4))
    vmem_limit = int(max(vmem_limit, vmem_est + (4 << 20)))

    out = pl.pallas_call(
        kernel,
        out_shape=jax.ShapeDtypeStruct((b_pad, n_pad), jnp.float32),
        grid_spec=pltpu.PrefetchScalarGridSpec(
            num_scalar_prefetch=1,                               # labels -> SMEM
            grid=grid,
            in_specs=[
                pl.BlockSpec((b_pad, 1), lambda n, lbl: (0, 0)),  # rx (resident)
                pl.BlockSpec((b_pad, K), lambda n, lbl: (0, 0)),  # x  (resident)
                pl.BlockSpec((tn, K),    lambda n, lbl: (n, 0)),  # W  (streamed tiles)
            ],
            out_specs=pl.BlockSpec((b_pad, tn), lambda n, lbl: (0, n)),
        ),
        compiler_params=pltpu.CompilerParams(
            dimension_semantics=("parallel",),
            vmem_limit_bytes=vmem_limit),
    )(labels, rx, xb, wb)

    return out[:B, :N]


# ---------------------------------------------------------------------------- #
# References for correctness checking
# ---------------------------------------------------------------------------- #
def _reference_f32(x, weight, label, *, s=SCALE, m=MARGIN, easy_margin=EASY_MARGIN):
    """Plain-JAX f32 transcription of the PyTorch module (including the row-0 quirk)."""
    x_n = x / jnp.maximum(jnp.linalg.norm(x, axis=-1, keepdims=True), EPS)
    w_n = weight / jnp.maximum(jnp.linalg.norm(weight, axis=-1, keepdims=True), EPS)
    cosine = x_n @ w_n.T
    sine = jnp.sqrt(jnp.clip(1.0 - cosine * cosine, 0.0, 1.0))
    cos_m, sin_m = math.cos(m), math.sin(m)
    th, mm = math.cos(math.pi - m), math.sin(math.pi - m) * m
    phi = cosine * cos_m - sine * sin_m
    phi = (jnp.where(cosine > 0.0, phi, cosine) if easy_margin
           else jnp.where(cosine > th, phi, cosine - mm))
    one_hot = jnp.zeros_like(cosine).at[0, label.astype(jnp.int32)].set(1.0)
    return (one_hot * phi + (1.0 - one_hot) * cosine) * s


def _reference_matched(x, weight, label, *, s=SCALE, m=MARGIN, easy_margin=EASY_MARGIN):
    """Reference that mirrors the kernel numerics (bf16 operands, f32 accumulation)."""
    xq = x.astype(jnp.bfloat16).astype(jnp.float32)
    wb = weight.astype(jnp.bfloat16)
    wq = wb.astype(jnp.float32)
    rx = jax.lax.rsqrt(jnp.maximum(
        jnp.sum(x.astype(jnp.float32) ** 2, axis=-1, keepdims=True), EPS * EPS))
    wsq = (wb * wb).astype(jnp.float32)          # bf16 squaring, f32 accumulation
    rw = jax.lax.rsqrt(jnp.maximum(
        jnp.sum(wsq, axis=-1, keepdims=True), EPS * EPS)).T      # (1, N)
    cosine = jnp.dot(xq, wq.T, precision=jax.lax.Precision.HIGHEST) * rx * rw
    sine = jnp.sqrt(jnp.clip(1.0 - cosine * cosine, 0.0, 1.0))
    cos_m, sin_m = math.cos(m), math.sin(m)
    th, mm = math.cos(math.pi - m), math.sin(math.pi - m) * m
    phi = cosine * cos_m - sine * sin_m
    phi = (jnp.where(cosine > 0.0, phi, cosine) if easy_margin
           else jnp.where(cosine > th, phi, cosine - mm))
    one_hot = jnp.zeros_like(cosine).at[0, label.astype(jnp.int32)].set(1.0)
    return (one_hot * phi + (1.0 - one_hot) * cosine) * s


def xavier_uniform(key, shape, dtype=jnp.float32):
    fan_out, fan_in = shape  # torch Linear-style weight (out, in)
    bound = math.sqrt(6.0 / (fan_in + fan_out))
    return jax.random.uniform(key, shape, dtype, minval=-bound, maxval=bound)


if __name__ == "__main__":
    in_features = 32
    out_features = 512
    batch = 8

    key = jax.random.PRNGKey(0)
    k_w, k_x, k_l = jax.random.split(key, 3)

    weight = xavier_uniform(k_w, (out_features, in_features))
    x = jax.random.normal(k_x, (batch, in_features), dtype=jnp.float32)
    label = jax.random.randint(k_l, (batch,), 0, out_features, dtype=jnp.int32)

    # Auto (generation-aware) tiling; grid-length>=4 cap keeps 4 steps over N=512.
    out = arc_margin_product(x, weight, label)
    jax.block_until_ready(out)
    assert out.shape == (batch, out_features)

    # Tight check against a reference mirroring the kernel's bf16/f32 numerics.
    ref_bf16 = _reference_matched(x, weight, label)
    err_bf16 = float(jnp.max(jnp.abs(out - ref_bf16)))
    assert err_bf16 < 5e-3, err_bf16

    # Loose sanity check against the pure-f32 reference (bf16 streaming error, s=30).
    ref_f32 = _reference_f32(x, weight, label)
    err_f32 = float(jnp.max(jnp.abs(out - ref_f32)))
    assert err_f32 < 0.25, err_f32

    print("KERNEL_OK")
</pallas_src>

<mosaic_0001>
module attributes {stable_mosaic.version = 11 : i64} {
  func.func @_arcmargin_kernel(%arg0: i32, %arg1: memref<8xi32, #tpu.memory_space<smem>>, %arg2: memref<8x1xf32, #tpu.memory_space<vmem>>, %arg3: memref<8x32xbf16, #tpu.memory_space<vmem>>, %arg4: memref<128x32xbf16, #tpu.memory_space<vmem>>, %arg5: memref<8x128xf32, #tpu.memory_space<vmem>>) attributes {dimension_semantics = [#tpu.dimension_semantics<parallel>], iteration_bounds = array<i64: 4>, scalar_prefetch = 1 : i64, scratch_operands = 0 : i64, tpu.core_type = #tpu.core_type<tc>, window_params = [{pipeline_mode = #tpu.pipeline_mode<synchronous>, transform_indices = @transform_0, window_bounds = array<i64: 8, 1>}, {pipeline_mode = #tpu.pipeline_mode<synchronous>, transform_indices = @transform_1, window_bounds = array<i64: 8, 32>}, {transform_indices = @transform_2, window_bounds = array<i64: 128, 32>}, {transform_indices = @transform_3, window_bounds = array<i64: 8, 128>}]} {
    %c0 = arith.constant 0 : index
    %c0_0 = arith.constant 0 : index
    %0 = vector.load %arg3[%c0, %c0_0] : memref<8x32xbf16, #tpu.memory_space<vmem>>, vector<8x32xbf16>
    %c0_1 = arith.constant 0 : index
    %c0_2 = arith.constant 0 : index
    %1 = vector.load %arg4[%c0_1, %c0_2] : memref<128x32xbf16, #tpu.memory_space<vmem>>, vector<128x32xbf16>
    %c0_3 = arith.constant 0 : index
    %c0_4 = arith.constant 0 : index
    %2 = vector.load %arg2[%c0_3, %c0_4] : memref<8x1xf32, #tpu.memory_space<vmem>>, vector<8x1xf32>
    %cst = arith.constant 1.000000e+00 : bf16
    %3 = vector.broadcast %cst : bf16 to vector<8x32xbf16>
    %4 = arith.mulf %1, %1 : vector<128x32xbf16>
    %cst_5 = arith.constant dense<0.000000e+00> : vector<8x128xf32>
    %5 = tpu.matmul %3, %4, %cst_5 {dimension_numbers = #tpu.dot_dimension_numbers<[1], [1], [0], [0], [0, 0, 1, 0], [], []>} : vector<8x32xbf16>, vector<128x32xbf16>, vector<8x128xf32> -> vector<8x128xf32>
    %6 = vector.extract_strided_slice %5 {offsets = [0, 0], sizes = [1, 128], strides = [1, 1]} : vector<8x128xf32> to vector<1x128xf32>
    %cst_6 = arith.constant 1.000000e-24 : f32
    %7 = vector.broadcast %cst_6 : f32 to vector<1x128xf32>
    %8 = arith.maximumf %6, %7 : vector<1x128xf32>
    %9 = math.rsqrt %8 : vector<1x128xf32>
    %cst_7 = arith.constant dense<0.000000e+00> : vector<8x128xf32>
    %10 = tpu.matmul %0, %1, %cst_7 {dimension_numbers = #tpu.dot_dimension_numbers<[1], [1], [0], [0], [0, 0, 1, 0], [], []>} : vector<8x32xbf16>, vector<128x32xbf16>, vector<8x128xf32> -> vector<8x128xf32>
    %11 = vector.broadcast %2 : vector<8x1xf32> to vector<8x128xf32>
    %12 = arith.mulf %10, %11 : vector<8x128xf32>
    %13 = vector.broadcast %9 : vector<1x128xf32> to vector<8x128xf32>
    %14 = arith.mulf %12, %13 : vector<8x128xf32>
    %15 = arith.mulf %14, %14 : vector<8x128xf32>
    %cst_8 = arith.constant 1.000000e+00 : f32
    %16 = vector.broadcast %cst_8 : f32 to vector<8x128xf32>
    %17 = arith.subf %16, %15 : vector<8x128xf32>
    %cst_9 = arith.constant 0.000000e+00 : f32
    %cst_10 = arith.constant 1.000000e+00 : f32
    %18 = vector.broadcast %cst_9 : f32 to vector<8x128xf32>
    %19 = arith.maximumf %18, %17 : vector<8x128xf32>
    %20 = vector.broadcast %cst_10 : f32 to vector<8x128xf32>
    %21 = arith.minimumf %20, %19 : vector<8x128xf32>
    %22 = math.sqrt %21 : vector<8x128xf32>
    %cst_11 = arith.constant 0.87758255 : f32
    %23 = vector.broadcast %cst_11 : f32 to vector<8x128xf32>
    %24 = arith.mulf %14, %23 : vector<8x128xf32>
    %cst_12 = arith.constant 0.47942555 : f32
    %25 = vector.broadcast %cst_12 : f32 to vector<8x128xf32>
    %26 = arith.mulf %22, %25 : vector<8x128xf32>
    %27 = arith.subf %24, %26 : vector<8x128xf32>
    %cst_13 = arith.constant -0.87758255 : f32
    %28 = vector.broadcast %cst_13 : f32 to vector<8x128xf32>
    %29 = arith.cmpf ogt, %14, %28 : vector<8x128xf32>
    %cst_14 = arith.constant 0.239712775 : f32
    %30 = vector.broadcast %cst_14 : f32 to vector<8x128xf32>
    %31 = arith.subf %14, %30 : vector<8x128xf32>
    %32 = arith.select %29, %27, %31 : vector<8x128xi1>, vector<8x128xf32>
    %c128_i32 = arith.constant 128 : i32
    %33 = arith.muli %arg0, %c128_i32 : i32
    %34 = tpu.iota {dimensions = array<i32: 1>} : vector<1x128xi32>
    %35 = vector.broadcast %33 : i32 to vector<1x128xi32>
    %36 = arith.addi %35, %34 : vector<1x128xi32>
    %c0_15 = arith.constant 0 : index
    %37 = memref.load %arg1[%c0_15] : memref<8xi32, #tpu.memory_space<smem>>
    %38 = vector.broadcast %37 : i32 to vector<1x128xi32>
    %39 = arith.cmpi eq, %36, %38 : vector<1x128xi32>
    %c1 = arith.constant 1 : index
    %40 = memref.load %arg1[%c1] : memref<8xi32, #tpu.memory_space<smem>>
    %41 = vector.broadcast %40 : i32 to vector<1x128xi32>
    %42 = arith.cmpi eq, %36, %41 : vector<1x128xi32>
    %43 = arith.ori %39, %42 : vector<1x128xi1>
    %c2 = arith.constant 2 : index
    %44 = memref.load %arg1[%c2] : memref<8xi32, #tpu.memory_space<smem>>
    %45 = vector.broadcast %44 : i32 to vector<1x128xi32>
    %46 = arith.cmpi eq, %36, %45 : vector<1x128xi32>
    %47 = arith.ori %43, %46 : vector<1x128xi1>
    %c3 = arith.constant 3 : index
    %48 = memref.load %arg1[%c3] : memref<8xi32, #tpu.memory_space<smem>>
    %49 = vector.broadcast %48 : i32 to vector<1x128xi32>
    %50 = arith.cmpi eq, %36, %49 : vector<1x128xi32>
    %51 = arith.ori %47, %50 : vector<1x128xi1>
    %c4 = arith.constant 4 : index
    %52 = memref.load %arg1[%c4] : memref<8xi32, #tpu.memory_space<smem>>
    %53 = vector.broadcast %52 : i32 to vector<1x128xi32>
    %54 = arith.cmpi eq, %36, %53 : vector<1x128xi32>
    %55 = arith.ori %51, %54 : vector<1x128xi1>
    %c5 = arith.constant 5 : index
    %56 = memref.load %arg1[%c5] : memref<8xi32, #tpu.memory_space<smem>>
    %57 = vector.broadcast %56 : i32 to vector<1x128xi32>
    %58 = arith.cmpi eq, %36, %57 : vector<1x128xi32>
    %59 = arith.ori %55, %58 : vector<1x128xi1>
    %c6 = arith.constant 6 : index
    %60 = memref.load %arg1[%c6] : memref<8xi32, #tpu.memory_space<smem>>
    %61 = vector.broadcast %60 : i32 to vector<1x128xi32>
    %62 = arith.cmpi eq, %36, %61 : vector<1x128xi32>
    %63 = arith.ori %59, %62 : vector<1x128xi1>
    %c7 = arith.constant 7 : index
    %64 = memref.load %arg1[%c7] : memref<8xi32, #tpu.memory_space<smem>>
    %65 = vector.broadcast %64 : i32 to vector<1x128xi32>
    %66 = arith.cmpi eq, %36, %65 : vector<1x128xi32>
    %67 = arith.ori %63, %66 : vector<1x128xi1>
    %68 = tpu.iota {dimensions = array<i32: 0>} : vector<8x128xi32>
    %c0_i32 = arith.constant 0 : i32
    %69 = vector.broadcast %c0_i32 : i32 to vector<8x128xi32>
    %70 = arith.cmpi eq, %68, %69 : vector<8x128xi32>
    %71 = vector.broadcast %67 : vector<1x128xi1> to vector<8x128xi1>
    %72 = arith.andi %70, %71 : vector<8x128xi1>
    %73 = arith.select %72, %32, %14 : vector<8x128xi1>, vector<8x128xf32>
    %cst_16 = arith.constant 3.000000e+01 : f32
    %74 = vector.broadcast %cst_16 : f32 to vector<8x128xf32>
    %75 = arith.mulf %73, %74 : vector<8x128xf32>
    %c0_17 = arith.constant 0 : index
    %c0_18 = arith.constant 0 : index
    %76 = vector.load %arg5[%c0_17, %c0_18] : memref<8x128xf32, #tpu.memory_space<vmem>>, vector<8x128xf32>
    tpu.vector_store %arg5[%c0_17, %c0_18], %75 {strides = array<i32>} : memref<8x128xf32, #tpu.memory_space<vmem>>, vector<8x128xf32>,
    return
  }
  func.func @transform_0(%arg0: i32, %arg1: memref<8xi32, #tpu.memory_space<smem>>) -> (i32, i32) {
    %c0_i32 = arith.constant 0 : i32
    %c0_i32_0 = arith.constant 0 : i32
    %c0_i32_1 = arith.constant 0 : i32
    return %c0_i32, %c0_i32_0 : i32, i32
  }
  func.func @transform_1(%arg0: i32, %arg1: memref<8xi32, #tpu.memory_space<smem>>) -> (i32, i32) {
    %c0_i32 = arith.constant 0 : i32
    %c0_i32_0 = arith.constant 0 : i32
    %c0_i32_1 = arith.constant 0 : i32
    return %c0_i32, %c0_i32_0 : i32, i32
  }
  func.func @transform_2(%arg0: i32, %arg1: memref<8xi32, #tpu.memory_space<smem>>) -> (i32, i32) {
    %c0_i32 = arith.constant 0 : i32
    %c0_i32_0 = arith.constant 0 : i32
    return %arg0, %c0_i32 : i32, i32
  }
  func.func @transform_3(%arg0: i32, %arg1: memref<8xi32, #tpu.memory_space<smem>>) -> (i32, i32) {
    %c0_i32 = arith.constant 0 : i32
    %c0_i32_0 = arith.constant 0 : i32
    return %c0_i32, %arg0 : i32, i32
  }
}

</mosaic_0001>

<bundles_post_ra>
// kernel: tpu_custom_call.1
= control target key start
LH: loop header
LB: loop body
LE: loop exit
PB: predicated region body
PF: predicated region fallthrough
CT: control target
= control target key end

     0   :  { %s708_s18 = smov [#allocation3]   ;;  %s872_s0 = inlined_call_operand.vmem [shape: s32[8], index: 0, kind: input, shape index: {}]   ;;  %s873_s1 = inlined_call_operand.vmem [shape: f32[8,1], index: 1, kind: input, shape index: {}]   ;;  %s874_s2 = inlined_call_operand.vmem [shape: bf16[8,32], index: 2, kind: input, shape index: {}]   ;;  %s875_s3 = inlined_call_operand.vmem [shape: bf16[512,32], index: 3, kind: input, shape index: {}]   ;;  %s876_s4 = inlined_call_operand.hbm [shape: f32[8,512], index: 4, kind: output, shape index: {}]  }
   0x1   :  { %s10_s17 = sshll.u32 %s872_s0, 4  ;;  %s11_s17 = int_to_ptr.vmem [resolvable:$true] %s10_s17 }
   0x2   :  { %13 = dma.vmem_to_smem %s11_s17, 16, %s708_s18, [#allocation2] }
   0x3   :  { %686 = dma.done.wait [#allocation2], 16 }
   0x4   :  { %687 = vsyncadd [#allocation2], 4294967280 }
   0x5   :  { %16 = sfence }
   0x6   :  { %17 = vsyncpa [#allocation5], 0 }
   0x7   :  { %19 = vsyncpa [#allocation5 + $0x1], 0  ;;  %s739_s19 = smov 0   ;;  %s741_s20 = smov 0  }
   0x8   :  { %s743_s21 = smov 0   ;;  %s745_s22 = smov 0  }
   0x9 LB: > { %s760_s0 = sadd.s32 4294967295, %s706_s22   ;;  %s521_s23 = sadd.s32 4294967294, %s706_s22   ;;  %s706_s22 = sphi %s745_s22, %s882_s22   ;;  %s702_s21 = sphi %s743_s21, %s881_s21   ;;  %s698_s20 = sphi %s741_s20, %s880_s20   ;;  %s694_s19 = sphi %s739_s19, %s879_s19  }
   0xa   : > { %s764_s24 = sadd.s32 1, %s706_s22   ;;  %s100_s25 = sadd.s32 1, %s702_s21 }
   0xb   : > { %s97_s26 = ssub.s32 %s706_s22, %s764_s24  ;;  %p110_p0 = scmp.ne.s32.totalorder %s702_s21, %s698_s20 }
   0xc   : > { %p98_p1 = scmp.eq.s32.totalorder %s97_s26, 0  ;;  %p111_p2 = scmp.eq.s32.totalorder %s760_s0, 3 }
   0xd   : > { %p116_p3 = scmp.ne.s32.totalorder %s698_s20, %s694_s19  ;;  %p117_p4 = scmp.eq.s32.totalorder %s521_s23, 3 }
   0xe   : > { %s775_s27 = scalar_select %p98_p1, %s702_s21, %s100_s25  }
   0xf   : > { %p777_p5 = por %p111_p2, %p110_p0  ;;  %p781_p6 = por %p117_p4, %p116_p3 }
  0x10   : > { %p524_p7 = scmp.ge.s32.totalorder %s706_s22, 1  ;;  %p150_p8 = scmp.lt.s32.totalorder %s706_s22, 5 }
  0x12   : > { %p151_p9 = pnand %p524_p7, %p150_p8 }
  0x13   : > { %s526_s30 = sshll.u32 (!%p151_p9), %s760_s0, 4  ;;  %s406_s13 = sld [smem:[#allocation3]] (!%p151_p9) }
  0x14   : > { %154 = sbr.rel (%p151_p9) target bundleno = 289 (0x121), region = 32  ;;  %p175_p10 = scmp.lt.s32.totalorder (!%p151_p9), %s526_s30, 63 }
  0x15   : > { %s564_s14 = sld [smem:[#allocation3 + $0x1]] (!%p151_p9)  ;;  %s563_s15 = sshll.u32 (!%p151_p9), %s760_s0, 7 }
  0x16   : > { %s565_s16 = sld [smem:[#allocation3 + $0x2]] (!%p151_p9)  ;;  %s572_s6 = sshll.u32 (!%p151_p9), %s760_s0, 3 }
  0x17   : > { %s566_s17 = sld [smem:[#allocation3 + $0x3]] (!%p151_p9)  ;;  %s457_s9 = scalar_lea.hbm (!%p151_p9), %s876_s4, %s572_s6 }
  0x18   : > { %s567_s18 = sld [smem:[#allocation3 + $0x4]] (!%p151_p9)  ;;  %s461_s0 = sshll.u32 (!%p151_p9), %s457_s9, 4  ;;  %s462_s0 = int_to_ptr.hbm [resolvable:$true] %s461_s0 }
  0x19   : > { %s884_s30 = smov (!%p175_p10, %s526_s30), 63  ;;  %vm239_vm0 = vcmask 261120   ;;  %v709_v53 = vmov 0   ;;  %v198_v57 = vld [vmem:[%s873_s1] sm:$0xff]  ;;  %s568_s23 = sld [smem:[#allocation3 + $0x5]] }
  0x1a   : > { %s527_s5 = sshll.u32 %s884_s30, 2  ;;  %625 = vset.pattern.permute.xlu0 %v709_v53  ;;  %s569_s25 = sld [smem:[#allocation3 + $0x6]] }
  0x1b   : > { %s791_s8 = scalar_lea.vmem %s875_s3, %s527_s5  ;;  %373 = vperm.xlu0 %625, %v198_v57   ;;  %s570_s26 = sld [smem:[#allocation3 + $0x7]] }
  0x1c   : > { %v196_v0 = vld [vmem:[%s791_s8 + $0x38] sm:$0xff]   ;;  %v194_v1 = vld [vmem:[%s791_s8 + $0x30] sm:$0xff]   ;;  %v192_v14 = vld [vmem:[%s791_s8 + $0x28] sm:$0xff]   ;;  %s171_s30 = sand.u32 1, %s698_s20  }
  0x1d   : > { %v582_v2 = vld [vmem:[%s791_s8 + $0x38] sm:$0xff]  ;;  %v213_v3 = vunpack.c.l.bf16 %v196_v0  ;;  %v214_v4 = vunpack.c.h.bf16 %v196_v0  ;;  %v211_v5 = vunpack.c.l.bf16 %v194_v1  ;;  %v212_v6 = vunpack.c.h.bf16 %v194_v1  ;;  %v581_v10 = vld [vmem:[%s791_s8 + $0x30] sm:$0xff]  ;;  %v580_v20 = vld [vmem:[%s791_s8 + $0x28] sm:$0xff]  ;;  %s525_s5 = sshll.u32 %s171_s30, 3  ;;  %s447_s12 = scalar_lea.sflag [#allocation5], %s171_s30 }
  0x1e   : > { %v356_v7 = vsel %vm239_vm0, %v582_v2, 0  ;;  %v353_v16 = vsel %vm239_vm0, %v581_v10, 0  ;;  %v209_v18 = vunpack.c.l.bf16 %v192_v14  ;;  %v210_v19 = vunpack.c.h.bf16 %v192_v14  ;;  %v190_v24 = vld [vmem:[%s791_s8 + $0x20] sm:$0xff]   ;;  %v188_v33 = vld [vmem:[%s791_s8 + $0x18] sm:$0xff]   ;;  %v186_v42 = vld [vmem:[%s791_s8 + $0x10] sm:$0xff]   ;;  %s173_s10 = scalar_lea.vmem [#allocation4], %s525_s5 }
  0x1f   : > { %v229_v8 = vmul.f32 %v213_v3, %v213_v3  ;;  %v230_v9 = vmul.f32 %v214_v4, %v214_v4  ;;  %358 = vmatpush.bf16.xpose.msra.mxu1 %v356_v7  ;;  %v227_v12 = vmul.f32 %v211_v5, %v211_v5  ;;  %v228_v13 = vmul.f32 %v212_v6, %v212_v6  ;;  %v579_v29 = vld [vmem:[%s791_s8 + $0x20] sm:$0xff]  ;;  %v578_v38 = vld [vmem:[%s791_s8 + $0x18] sm:$0xff]  ;;  %v577_v47 = vld [vmem:[%s791_s8 + $0x10] sm:$0xff]  ;;  %s459_s11 = sshll.u32 %s173_s10, 4  ;;  %s460_s11 = int_to_ptr.vmem [resolvable:$true] %s459_s11 }
  0x20   : > { %v225_v22 = vmul.f32 %v209_v18, %v209_v18  ;;  %v226_v23 = vmul.f32 %v210_v19, %v210_v19  ;;  %v350_v25 = vsel %vm239_vm0, %v580_v20, 0  ;;  %v207_v27 = vunpack.c.l.bf16 %v190_v24  ;;  %v184_v51 = vld [vmem:[%s791_s8 + $0x8] sm:$0xff]   ;;  %v182_v62 = vld [vmem:[%s791_s8] sm:$0xff]  }
  0x21   : > { %v238_v11 = vpack.c.bf16 %v230_v9, %v229_v8  ;;  %v237_v17 = vpack.c.bf16 %v228_v13, %v227_v12  ;;  %v208_v28 = vunpack.c.h.bf16 %v190_v24  ;;  %v347_v34 = vsel %vm239_vm0, %v579_v29, 0  ;;  %v576_v58 = vld [vmem:[%s791_s8 + $0x8] sm:$0xff]  ;;  %v575_v3 = vld [vmem:[%s791_s8] sm:$0xff] }
  0x22   : > { %v236_v26 = vpack.c.bf16 %v226_v23, %v225_v22  ;;  %v223_v31 = vmul.f32 %v207_v27, %v207_v27  ;;  %v205_v36 = vunpack.c.l.bf16 %v188_v33  ;;  %v206_v37 = vunpack.c.h.bf16 %v188_v33  ;;  %v181_v10 = vld [vmem:[%s874_s2] sm:$0xf] }
  0x23   : > { %v265_v15 = vsel %vm239_vm0, %v238_v11, 0  ;;  %v262_v21 = vsel %vm239_vm0, %v237_v17, 0  ;;  %v224_v32 = vmul.f32 %v208_v28, %v208_v28  ;;  %v344_v43 = vsel %vm239_vm0, %v578_v38, 0 }
  0x24   : > { %267 = vmatpush.bf16.xpose.msra.mxu0 %v265_v15  ;;  %v259_v30 = vsel %vm239_vm0, %v236_v26, 0  ;;  %v221_v40 = vmul.f32 %v205_v36, %v205_v36  ;;  %v222_v41 = vmul.f32 %v206_v37, %v206_v37  ;;  %v203_v45 = vunpack.c.l.bf16 %v186_v42 }
  0x25   : > { %v235_v35 = vpack.c.bf16 %v224_v32, %v223_v31  ;;  %v204_v46 = vunpack.c.h.bf16 %v186_v42  ;;  %v341_v52 = vsel %vm239_vm0, %v577_v47, 0  ;;  %v201_v55 = vunpack.c.l.bf16 %v184_v51 }
  0x26   : > { %v234_v44 = vpack.c.bf16 %v222_v41, %v221_v40  ;;  %v219_v49 = vmul.f32 %v203_v45, %v203_v45  ;;  %v202_v56 = vunpack.c.h.bf16 %v184_v51  ;;  %v338_v63 = vsel %vm239_vm0, %v576_v58, 0 }
  0x27   : > { %359 = vmatpush.bf16.xpose.msra.mxu1 %v353_v16  ;;  %v256_v39 = vsel %vm239_vm0, %v235_v35, 0  ;;  %v220_v50 = vmul.f32 %v204_v46, %v204_v46  ;;  %v217_v60 = vmul.f32 %v201_v55, %v201_v55  ;;  %v199_v1 = vunpack.c.l.bf16 %v182_v62 }
  0x28   : > { %v253_v48 = vsel %vm239_vm0, %v234_v44, 0  ;;  %v218_v61 = vmul.f32 %v202_v56, %v202_v56  ;;  %v200_v2 = vunpack.c.h.bf16 %v182_v62  ;;  %v335_v7 = vsel %vm239_vm0, %v575_v3, 0 }
  0x29   : > { %v233_v54 = vpack.c.bf16 %v220_v50, %v219_v49  ;;  %v215_v5 = vmul.f32 %v199_v1, %v199_v1  ;;  %v710_v11 = vmov 1065369472   ;;  %v402_v20 = vlaneseq }
  0x2a   : > { %v232_v0 = vpack.c.bf16 %v218_v61, %v217_v60  ;;  %v216_v6 = vmul.f32 %v200_v2, %v200_v2  ;;  %v404_v26 = vstv %s563_s15  ;;  %v407_v31 = vstv %s406_s13  ;;  %s656_s13 = sshra.s32 %s462_s0, 4  ;;  %s657_s13 = int_to_ptr.hbm [resolvable:$true] %s656_s13 }
  0x2b   : > { %v250_v59 = vsel %vm239_vm0, %v233_v54, 0  ;;  %v403_v24 = vand.u32 127, %v402_v20  ;;  %v410_v32 = vstv %s564_s14  ;;  %v414_v35 = vstv %s565_s16  ;;  %s658_s14 = scalar_lea.hbm %s657_s13, 8  ;;  %p663_p0 = scmp.lt.s32.totalorder %s657_s13, %s876_s4 }
  0x2c   : > { %268 = vmatpush.bf16.xpose.msra.mxu0 %v262_v21  ;;  %v247_v4 = vsel %vm239_vm0, %v232_v0, 0  ;;  %v231_v8 = vpack.c.bf16 %v216_v6, %v215_v5  ;;  %v418_v37 = vstv %s566_s17  ;;  %v422_v40 = vstv %s567_s18  ;;  %p659_p11 = scmp.ne.s32.totalorder %s657_s13, %s658_s14  ;;  %s662_s17 = scalar_lea.hbm %s876_s4, 32 }
  0x2d   : > { %v426_v41 = vstv %s568_s23  ;;  %v430_v42 = vstv %s569_s25  ;;  %v434_v45 = vstv %s570_s26  ;;  %v438_v50 = vshrl.u32 %v402_v20, 7  ;;  %p664_p1 = scmp.lt.s32.totalorder %s662_s17, %s658_s14 }
  0x2e   : > { %v244_v9 = vsel %vm239_vm0, %v231_v8, 0  ;;  %p660_p12 = pnand %p659_p11, %p777_p5 }
  0x2f   : > { %360 = vmatpush.bf16.xpose.msra.mxu1 %v350_v25  ;;  %p665_p2 = por %p664_p1, %p663_p0 }
  0x30   : > { %p661_p13 = pneg %p660_p12 }
  0x32   : > { %p666_p3 = pnand %p665_p2, %p661_p13 }
  0x34   : > { %269 = vmatpush.bf16.xpose.msra.mxu0 %v259_v30  ;;  %v405_v30 = vadd.s32 %v404_v26, %v403_v24 }
  0x36   : > { %vm408_vm4 = vcmp.eq.s32.totalorder %v405_v30, %v407_v31  ;;  %vm411_vm5 = vcmp.eq.s32.totalorder %v405_v30, %v410_v32  ;;  %vm415_vm7 = vcmp.eq.s32.totalorder %v405_v30, %v414_v35  ;;  %vm419_vm9 = vcmp.eq.s32.totalorder %v405_v30, %v418_v37 }
  0x37   : > { %361 = vmatpush.bf16.xpose.msra.mxu1 %v347_v34  ;;  %vm412_vm6 = vmor %vm408_vm4, %vm411_vm5  ;;  %vm423_vm11 = vcmp.eq.s32.totalorder %v405_v30, %v422_v40  ;;  %vm427_vm13 = vcmp.eq.s32.totalorder %v405_v30, %v426_v41  ;;  %vm431_vm15 = vcmp.eq.s32.totalorder %v405_v30, %v430_v42  ;;  %vm439_vm5 = vcmp.eq.s32.totalorder %v438_v50, 0 }
  0x38   : > { %vm416_vm8 = vmor %vm412_vm6, %vm415_vm7 }
  0x39   : > { %vm420_vm10 = vmor %vm416_vm8, %vm419_vm9 }
  0x3a   : > { %vm424_vm12 = vmor %vm420_vm10, %vm423_vm11 }
  0x3b   : > { %vm428_vm14 = vmor %vm424_vm12, %vm427_vm13 }
  0x3c   : > { %270 = vmatpush.bf16.xpose.msra.mxu0 %v256_v39 }
  0x3f   : > { %362 = vmatpush.bf16.xpose.msra.mxu1 %v344_v43 }
  0x44   : > { %271 = vmatpush.bf16.xpose.msra.mxu0 %v253_v48 }
  0x47   : > { %363 = vmatpush.bf16.xpose.msra.mxu1 %v341_v52 }
  0x4c   : > { %272 = vmatpush.bf16.xpose.msra.mxu0 %v250_v59 }
  0x4f   : > { %364 = vmatpush.bf16.xpose.msra.mxu1 %v338_v63 }
  0x54   : > { %273 = vmatpush.bf16.xpose.msra.mxu0 %v247_v4 }
  0x57   : > { %365 = vmatpush.bf16.xpose.msra.mxu1 %v335_v7 }
  0x5c   : > { %274 = vmatpush.bf16.xpose.msra.mxu0 %v244_v9 }
  0x5e   : > { %561 = vmatmul.msk.bf16.vlgmr.msra.gmra.mxu1 %vm239_vm0, %v181_v10 }
  0x63   : > { %528 = vmatmul.msk.bf16.vlgmr.msra.gmra.mxu0 %vm239_vm0, %v710_v11  ;;  %vm432_vm0 = vmor %vm428_vm14, %vm431_vm15 }
  0x8d   : > { %v374_v23 = vpop.permute.xlu0 %373 }
  0xdb   : > { %v367_v12 = vpop.f32.mrf.mxu1 }
  0xdc   : > { %v376_v27 = vmul.f32 %v374_v23, %v367_v12 }
  0xe0   : > { %v276_v13 = vpop.f32.mrf.mxu0 }
  0xe1   : > { %v280_v14 = vmax.f32 %v276_v13, 1e-24 }
  0xe3   : > { %626 = vrsqrt.f32 %v280_v14  ;;  %v369_v15 = vpop.f32.mrf.mxu1  ;;  %vm287_vm2 = vweird.f32 %v280_v14 }
  0xe8   : > { %v278_v16 = vpop.f32.mrf.mxu0 }
  0xe9   : > { %v627_v17 = vpop.eup %626 }
  0xea   : > { %v282_v18 = vmul.f32 %v627_v17, %v280_v14  ;;  %vm288_vm1 = vweird.f32 %v627_v17 }
  0xeb   : > { %vm289_vm3 = vmor %vm287_vm2, %vm288_vm1  ;;  %vm435_vm1 = vcmp.eq.s32.totalorder %v405_v30, %v434_v45 }
  0xec   : > { %v283_v19 = vmul.f32 %v627_v17, %v282_v18  ;;  %vm436_vm2 = vmor %vm432_vm0, %vm435_vm1 }
  0xed   : > { %v440_v51 = vsel %vm436_vm2, 1, %v709_v53 }
  0xee   : > { %v284_v21 = vmul.f32 0.5, %v283_v19  ;;  %vm441_vm6 = vcmp.eq.s32.totalorder %v440_v51, 1 }
  0xef   : > { %vm442_vm7 = vmand %vm439_vm5, %vm441_vm6 }
  0xf0   : > { %v285_v22 = vsub.f32 1.5, %v284_v21 }
  0xf2   : > { %v286_v25 = vmul.f32 %v627_v17, %v285_v22 }
  0xf4   : > { %v290_v28 = vsel %vm289_vm3, %v627_v17, %v286_v25 }
  0xf5   : > { %v377_v29 = vperm.slane %v290_v28, 0 }
  0xf7   : > { %v378_v33 = vmul.f32 %v377_v29, %v376_v27 }
  0xf9   : > { %v379_v34 = vmul.f32 %v378_v33, %v378_v33  ;;  %v395_v57 = vmul.f32 0.87758255, %v378_v33  ;;  %v562_v59 = vadd.f32 -0.23971277, %v378_v33  ;;  %vm398_vm8 = vcmp.gt.f32.partialorder %v378_v33, -0.87758255 }
  0xfb   : > { %v380_v36 = vsub.f32 1.0, %v379_v34 }
  0xfd   : > { %v381_v38 = vmax.f32 %v380_v36, 0.0 }
  0xff   : > { %v382_v39 = vmin.f32 %v381_v38, 1.0 }
 0x101   : > { %628 = vrsqrt.f32 %v382_v39  ;;  %vm390_vm3 = vcmp.eq.f32.partialorder %v382_v39, inf  ;;  %v393_v54 = vand.u32 2147483648, %v382_v39  ;;  %vm392_vm4 = vcmp.eq.f32.partialorder %v382_v39, 0.0 }
 0x107   : > { %v629_v43 = vpop.eup %628 }
 0x108   : > { %v384_v44 = vmul.f32 %v629_v43, %v382_v39 }
 0x10a   : > { %v385_v46 = vmul.f32 %v629_v43, %v384_v44 }
 0x10c   : > { %v386_v47 = vmul.f32 0.5, %v385_v46 }
 0x10e   : > { %v387_v48 = vsub.f32 1.5, %v386_v47 }
 0x110   : > { %v388_v49 = vmul.f32 %v629_v43, %v387_v48 }
 0x112   : > { %v389_v52 = vmul.f32 %v388_v49, %v382_v39 }
 0x114   : > { %v391_v55 = vsel %vm390_vm3, %v382_v39, %v389_v52 }
 0x115   : > { %v394_v56 = vsel %vm392_vm4, %v393_v54, %v391_v55 }
 0x116   : > { %v396_v58 = vmul.f32 0.47942555, %v394_v56 }
 0x118   : > { %v397_v53 = vsub.f32 %v395_v57, %v396_v58 }
 0x11a   : > { %v400_v60 = vsel %vm398_vm8, %v397_v53, %v562_v59 }
 0x11b   : > { %v443_v61 = vsel %vm442_vm7, %v400_v60, %v378_v33 }
 0x11c   : > { %v444_v62 = vmul.f32 30.0, %v443_v61 }
 0x11e   : > { %445 = vst [vmem:[%s173_s10] sm:$0xff] %v444_v62 }
 0x11f   : > { %669 = shalt.err (!%p666_p3)
}
 0x120   : > { %583 = dma.vmem_to_hbm [thread:$0]  (%p777_p5), %s460_s11, 128, %s462_s0, %s447_s12  }
 0x121 PF: > { %p589_p4 = scmp.ge.s32.totalorder %s706_s22, 2  ;;  %s473_s25 = sand.u32 1, %s694_s19  }
 0x122   : > { %s474_s26 = scalar_lea.sflag [#allocation5], %s473_s25 }
 0x123   : > { %p586_p7 = pnand %p589_p4, %p781_p6 }
 0x125   : > { %p587_p8 = pneg %p586_p7 }
 0x127   : > { %689 = dma.done.wait (%p587_p8), %s474_s26, 128  }
 0x128   : > { %691 = vsyncadd (%p587_p8), %s474_s26, 4294967168  ;;  %p22_p9 = scmp.ge.s32.totalorder %s764_s24, 6   ;;  %s879_s19 = smov %s698_s20 }
 0x129   : > { %s880_s20 = smov %s702_s21  ;;  %s881_s21 = smov %s775_s27 }
 0x12a   : > { %s882_s22 = smov %s764_s24  ;;  %24 = sbr.rel (!%p22_p9) target bundleno = 9 (0x9), region = 67 }
 0x12f   :  { %480 = vsyncpa [#allocation5], 1 }
 0x130   :  { %482 = vsyncpa [#allocation5 + $0x1], 1 }

</bundles_post_ra>
